<compile_context>
chip_gen: v5e
topology: v5e:2x2
jax: 0.10.0
libtpu: 0.0.40
codegen_flags: <defaults>
</compile_context>

<pallas_src>
from functools import partial

import jax
import jax.numpy as jnp
from jax.experimental import pallas as pl
from jax.experimental.pallas import tpu as pltpu

_MIB = 1024 * 1024


def _budgets():
    """Generation-aware (target_tile_bytes, vmem_limit_bytes)."""
    try:
        cap = pltpu.get_tpu_info().vmem_capacity_bytes
    except Exception:
        # Unknown part: conservative tile, leave the compiler's default limit.
        return 4 * _MIB, None
    if cap >= 100 * _MIB:
        # v5e / v6e class (128 MiB VMEM): big tiles, generous scoped limit.
        return 8 * _MIB, 96 * _MIB
    # v7x class (64 MiB VMEM) or smaller: leave headroom for double-buffered
    # in/out tiles plus ~2-3x tile of body temporaries (peak ~6x tile).
    return min(6 * _MIB, cap // 8), min(48 * _MIB, (cap * 3) // 4)


def _sublane_multiple(dtype):
    # f32 -> 8, bf16 -> 16, int8/fp8 -> 32 (packed-sublane friendly blocks).
    return max(8, 32 // jnp.dtype(dtype).itemsize)


def _shift_flat(x, k):
    """y[..., i] = x[..., i + k] for i < n - k.  The tail wraps; every caller
    masks the tail, so the wrapped content is a don't-care."""
    n = x.shape[-1]
    if n % 128 == 0:
        # XLU lane rotation: separate VLIW slot, no full-size VMEM temporary.
        return pltpu.roll(x, shift=n - k, axis=x.ndim - 1)
    # Unaligned lane extent: slice + concat is correct for any size.
    return jnp.concatenate([x[..., k:], x[..., :k]], axis=-1)


# ---------------------------------------------------------------------------
# Main path: (N*C, H*W) lane-dense blocks.
# ---------------------------------------------------------------------------
def _maxpool_flat_kernel(w, lastcol_ref, lastrow_ref, x_ref, o_ref):
    # x_ref/o_ref: (cb, H*W); rows are independent (n, c) planes.
    # lastcol_ref/lastrow_ref: (1, H*W) int32 masks, VMEM-resident across steps.
    x = x_ref[...]
    last_col = lastcol_ref[...] != 0          # j == W-1  -> replicate right edge
    last_row = lastrow_ref[...] != 0          # i == H-1  -> replicate bottom edge

    x_right = _shift_flat(x, 1)               # x[k + 1]
    m = jnp.maximum(x, jnp.where(last_col, x, x_right))

    m_down = _shift_flat(m, w)                # m[k + W]
    o_ref[...] = jnp.maximum(m, jnp.where(last_row, m, m_down))


def _maxpool_flat(x4, target_block_bytes, vmem_limit):
    N, C, H, W = x4.shape
    nc, hw = N * C, H * W
    xf = x4.reshape(nc, hw)
    itemsize = xf.dtype.itemsize
    smult = _sublane_multiple(xf.dtype)

    if nc <= smult:
        cb, n_blocks = nc, 1                  # single full-extent block
    else:
        bytes_per_row = hw * itemsize
        rows_cap = max(smult, (target_block_bytes // bytes_per_row) // smult * smult)
        # Balanced blocks: pick the step count first (>= 2 so v7x's two
        # TensorCores both get work), then round the block up to the sublane
        # multiple.  Avoids a nearly-empty ragged tail block.
        n_blocks = max(2, pl.cdiv(nc, rows_cap))
        n_blocks = min(n_blocks, pl.cdiv(nc, smult))
        cb = pl.cdiv(pl.cdiv(nc, n_blocks), smult) * smult
        n_blocks = pl.cdiv(nc, cb)

    # Tile-invariant replicate-boundary masks, hoisted out of the kernel body.
    col = jnp.arange(hw, dtype=jnp.int32)
    last_col = ((col % W) == (W - 1)).astype(jnp.int32).reshape(1, hw)
    last_row = (col >= (hw - W)).astype(jnp.int32).reshape(1, hw)

    out_flat = pl.pallas_call(
        partial(_maxpool_flat_kernel, W),
        out_shape=jax.ShapeDtypeStruct((nc, hw), xf.dtype),
        grid_spec=pltpu.PrefetchScalarGridSpec(
            num_scalar_prefetch=0,
            grid=(n_blocks,),
            in_specs=[
                pl.BlockSpec((1, hw), lambda i: (0, 0)),   # last-col mask (resident)
                pl.BlockSpec((1, hw), lambda i: (0, 0)),   # last-row mask (resident)
                pl.BlockSpec((cb, hw), lambda i: (i, 0)),
            ],
            out_specs=pl.BlockSpec((cb, hw), lambda i: (i, 0)),
        ),
        compiler_params=pltpu.CompilerParams(
            dimension_semantics=("parallel",),
            vmem_limit_bytes=vmem_limit,
        ),
    )(last_col, last_row, xf)
    return out_flat.reshape(N, C, H, W)


# ---------------------------------------------------------------------------
# Large-plane fallback: tile H with a 1-row halo.
# ---------------------------------------------------------------------------
def _maxpool_htiled_kernel(h, lastcol_ref, x_ref, halo_ref, o_ref):
    # x_ref/o_ref: (cb, th, W).  halo_ref: (1, cb, 1, W) = the row just below
    # this h-tile (clamped to the global last row for the final tile).
    hi = pl.program_id(1)
    x = x_ref[...]
    th = x.shape[1]
    last_col = lastcol_ref[...] != 0              # (1, 1, W)

    x_right = _shift_flat(x, 1)
    m = jnp.maximum(x, jnp.where(last_col, x, x_right))

    halo = halo_ref[0]                            # (cb, 1, W)
    halo_right = _shift_flat(halo, 1)
    mh = jnp.maximum(halo, jnp.where(last_col, halo, halo_right))

    # Bottom neighbour: rows 0..th-2 from inside the tile, row th-1 from halo.
    m_down = jnp.concatenate([m[:, 1:, :], mh], axis=1)

    # Replicate at the global last row.  This also neutralizes padded rows of a
    # ragged last h-tile (whose in-tile "next row" is undefined data).
    g = jax.lax.broadcasted_iota(jnp.int32, (1, th, 1), 1) + hi * th
    m_down = jnp.where(g >= h - 1, m, m_down)

    o_ref[...] = jnp.maximum(m, m_down)


def _maxpool_htiled(x4, target_block_bytes, vmem_limit):
    N, C, H, W = x4.shape
    nc = N * C
    x3 = x4.reshape(nc, H, W)
    itemsize = x3.dtype.itemsize
    smult = _sublane_multiple(x3.dtype)

    cb = nc if nc <= smult else smult
    row_bytes = W * itemsize
    th = (target_block_bytes // max(1, cb * row_bytes)) // 8 * 8
    th = max(8, th)
    if th >= H:
        th = H                                    # full extent is always legal
    n_h = pl.cdiv(H, th)
    n_nc = pl.cdiv(nc, cb)

    # Halo rows gathered in the wrapper (tiny: nc * n_h * W elements): for each
    # h-tile, the first row of the next tile; the last tile gets the global
    # last row (its value is masked out by the replicate test in the kernel).
    halo_idx = jnp.minimum((jnp.arange(n_h) + 1) * th, H - 1)
    halo = jnp.transpose(x3[:, halo_idx, :], (1, 0, 2)).reshape(n_h, nc, 1, W)

    last_col = (jnp.arange(W, dtype=jnp.int32) == (W - 1)).astype(jnp.int32)
    last_col = last_col.reshape(1, 1, W)

    out = pl.pallas_call(
        partial(_maxpool_htiled_kernel, H),
        out_shape=jax.ShapeDtypeStruct((nc, H, W), x3.dtype),
        grid_spec=pltpu.PrefetchScalarGridSpec(
            num_scalar_prefetch=0,
            grid=(n_nc, n_h),
            in_specs=[
                pl.BlockSpec((1, 1, W), lambda i, j: (0, 0, 0)),       # mask (resident)
                pl.BlockSpec((cb, th, W), lambda i, j: (i, j, 0)),     # main tile
                pl.BlockSpec((1, cb, 1, W), lambda i, j: (j, i, 0, 0)),  # 1-row halo
            ],
            out_specs=pl.BlockSpec((cb, th, W), lambda i, j: (i, j, 0)),
        ),
        compiler_params=pltpu.CompilerParams(
            dimension_semantics=("parallel", "parallel"),
            vmem_limit_bytes=vmem_limit,
        ),
    )(last_col, x3, halo)
    return out.reshape(N, C, H, W)


# ---------------------------------------------------------------------------
# Public entry point.
# ---------------------------------------------------------------------------
def maxpool_stride1(x, *, target_block_bytes=None, force_h_tiling=False):
    """x: (N, C, H, W) -> (N, C, H, W), replicate-padded 2x2 max pool, stride 1."""
    N, C, H, W = x.shape
    nc, hw = N * C, H * W
    itemsize = jnp.dtype(x.dtype).itemsize
    smult = _sublane_multiple(x.dtype)

    auto_tile, vmem_limit = _budgets()
    if target_block_bytes is None:
        target_block_bytes = auto_tile

    # Smallest legal flat block (sublane-aligned rows x full H*W lanes).
    min_flat_block = min(nc, smult) * hw * itemsize
    use_htiled = (force_h_tiling or min_flat_block > target_block_bytes) and H > 1
    if use_htiled:
        return _maxpool_htiled(x, target_block_bytes, vmem_limit)
    return _maxpool_flat(x, target_block_bytes, vmem_limit)


def _reference(x):
    # Pure-JAX reference (replicate pad bottom/right, 2x2 max, stride 1).
    xp = jnp.pad(x, ((0, 0), (0, 0), (0, 1), (0, 1)), mode="edge")
    return jnp.maximum(
        jnp.maximum(xp[:, :, :-1, :-1], xp[:, :, :-1, 1:]),
        jnp.maximum(xp[:, :, 1:, :-1], xp[:, :, 1:, 1:]),
    )


if __name__ == "__main__":
    key = jax.random.PRNGKey(0)
    k1, k2, k3 = jax.random.split(key, 3)

    # 1) Primary shape (module's typical use): main flat path, single block.
    x1 = jax.random.normal(k1, (2, 4, 16, 16), dtype=jnp.float32)
    o1 = maxpool_stride1(x1)
    jax.block_until_ready(o1)
    assert o1.shape == x1.shape
    assert jnp.allclose(o1, _reference(x1)), "flat path mismatch"

    # 2) Ragged NC block (15 planes) + lane extent not a multiple of 128 (HW=63).
    x2 = jax.random.normal(k2, (3, 5, 9, 7), dtype=jnp.float32)
    o2 = maxpool_stride1(x2)
    jax.block_until_ready(o2)
    assert jnp.allclose(o2, _reference(x2)), "flat path (ragged) mismatch"

    # 3) Force the large-plane H-tiled path (1-row halo), ragged H and NC.
    x3 = jax.random.normal(k3, (3, 5, 12, 16), dtype=jnp.float32)
    o3 = maxpool_stride1(x3, target_block_bytes=4096, force_h_tiling=True)
    jax.block_until_ready(o3)
    assert jnp.allclose(o3, _reference(x3)), "h-tiled path mismatch"

    print("KERNEL_OK")
</pallas_src>

<mosaic_0001>
module attributes {stable_mosaic.version = 11 : i64} {
  func.func @_maxpool_flat_kernel(%arg0: i32, %arg1: memref<1x256xi32, #tpu.memory_space<vmem>>, %arg2: memref<1x256xi32, #tpu.memory_space<vmem>>, %arg3: memref<8x256xf32, #tpu.memory_space<vmem>>, %arg4: memref<8x256xf32, #tpu.memory_space<vmem>>) attributes {dimension_semantics = [#tpu.dimension_semantics<parallel>], iteration_bounds = array<i64: 1>, scalar_prefetch = 0 : i64, scratch_operands = 0 : i64, tpu.core_type = #tpu.core_type<tc>, window_params = [{pipeline_mode = #tpu.pipeline_mode<synchronous>, transform_indices = @transform_0, window_bounds = array<i64: 1, 256>}, {pipeline_mode = #tpu.pipeline_mode<synchronous>, transform_indices = @transform_1, window_bounds = array<i64: 1, 256>}, {transform_indices = @transform_2, window_bounds = array<i64: 8, 256>}, {transform_indices = @transform_3, window_bounds = array<i64: 8, 256>}]} {
    %c0 = arith.constant 0 : index
    %c0_0 = arith.constant 0 : index
    %0 = vector.load %arg3[%c0, %c0_0] : memref<8x256xf32, #tpu.memory_space<vmem>>, vector<8x256xf32>
    %c0_1 = arith.constant 0 : index
    %c0_2 = arith.constant 0 : index
    %1 = vector.load %arg1[%c0_1, %c0_2] : memref<1x256xi32, #tpu.memory_space<vmem>>, vector<1x256xi32>
    %c0_i32 = arith.constant 0 : i32
    %2 = vector.broadcast %c0_i32 : i32 to vector<1x256xi32>
    %3 = arith.cmpi ne, %1, %2 : vector<1x256xi32>
    %c0_3 = arith.constant 0 : index
    %c0_4 = arith.constant 0 : index
    %4 = vector.load %arg2[%c0_3, %c0_4] : memref<1x256xi32, #tpu.memory_space<vmem>>, vector<1x256xi32>
    %c0_i32_5 = arith.constant 0 : i32
    %5 = vector.broadcast %c0_i32_5 : i32 to vector<1x256xi32>
    %6 = arith.cmpi ne, %4, %5 : vector<1x256xi32>
    %c255_i32 = arith.constant 255 : i32
    %7 = tpu.dynamic_rotate %0 by %c255_i32 dim 1 : vector<8x256xf32>, i32 -> vector<8x256xf32>
    %8 = vector.shape_cast %3 : vector<1x256xi1> to vector<1x256xi1>
    %9 = vector.broadcast %8 : vector<1x256xi1> to vector<8x256xi1>
    %10 = arith.select %9, %0, %7 : vector<8x256xi1>, vector<8x256xf32>
    %11 = arith.maximumf %0, %10 : vector<8x256xf32>
    %c240_i32 = arith.constant 240 : i32
    %12 = tpu.dynamic_rotate %11 by %c240_i32 dim 1 : vector<8x256xf32>, i32 -> vector<8x256xf32>
    %13 = vector.shape_cast %6 : vector<1x256xi1> to vector<1x256xi1>
    %14 = vector.broadcast %13 : vector<1x256xi1> to vector<8x256xi1>
    %15 = arith.select %14, %11, %12 : vector<8x256xi1>, vector<8x256xf32>
    %16 = arith.maximumf %11, %15 : vector<8x256xf32>
    %c0_6 = arith.constant 0 : index
    %c0_7 = arith.constant 0 : index
    %17 = vector.load %arg4[%c0_6, %c0_7] : memref<8x256xf32, #tpu.memory_space<vmem>>, vector<8x256xf32>
    tpu.vector_store %arg4[%c0_6, %c0_7], %16 {strides = array<i32>} : memref<8x256xf32, #tpu.memory_space<vmem>>, vector<8x256xf32>,
    return
  }
  func.func @transform_0(%arg0: i32) -> (i32, i32) {
    %c0_i32 = arith.constant 0 : i32
    %c0_i32_0 = arith.constant 0 : i32
    %c0_i32_1 = arith.constant 0 : i32
    return %c0_i32, %c0_i32_0 : i32, i32
  }
  func.func @transform_1(%arg0: i32) -> (i32, i32) {
    %c0_i32 = arith.constant 0 : i32
    %c0_i32_0 = arith.constant 0 : i32
    %c0_i32_1 = arith.constant 0 : i32
    return %c0_i32, %c0_i32_0 : i32, i32
  }
  func.func @transform_2(%arg0: i32) -> (i32, i32) {
    %c0_i32 = arith.constant 0 : i32
    %c0_i32_0 = arith.constant 0 : i32
    return %arg0, %c0_i32 : i32, i32
  }
  func.func @transform_3(%arg0: i32) -> (i32, i32) {
    %c0_i32 = arith.constant 0 : i32
    %c0_i32_0 = arith.constant 0 : i32
    return %arg0, %c0_i32 : i32, i32
  }
}

</mosaic_0001>

<bundles_post_ra>
// kernel: tpu_custom_call.1
= control target key start
LH: loop header
LB: loop body
LE: loop exit
PB: predicated region body
PF: predicated region fallthrough
CT: control target
= control target key end

     0   :  { %8 = vsyncpa [#allocation3], 0  ;;  %s264_s0 = inlined_call_operand.hbm [shape: s32[1,256], index: 0, kind: input, shape index: {}]   ;;  %s265_s1 = inlined_call_operand.hbm [shape: s32[1,256], index: 1, kind: input, shape index: {}]   ;;  %s266_s2 = inlined_call_operand.hbm [shape: f32[8,256], index: 2, kind: input, shape index: {}]   ;;  %s267_s3 = inlined_call_operand.hbm [shape: f32[8,256], index: 3, kind: output, shape index: {}]  }
   0x1   :  { %9 = vsyncpa [#allocation6], 0  ;;  %s27_s14 = sshll.u32 %s265_s1, 4  ;;  %s28_s14 = int_to_ptr.hbm [resolvable:$true] %s27_s14 }
   0x2   :  { %10 = vsyncpa [#allocation4], 0  ;;  %s225_s15 = smov [#allocation5]   ;;  %s16_s19 = sshll.u32 %s264_s0, 4  ;;  %s17_s19 = int_to_ptr.hbm [resolvable:$true] %s16_s19 }
   0x3   :  { %s29_s16 = sshll.u32 %s225_s15, 4  ;;  %s226_s20 = smov [#allocation2]   ;;  %s30_s16 = int_to_ptr.vmem [resolvable:$true] %s29_s16 }
   0x4   :  { %32 = dma.hbm_to_vmem [thread:$0]  %s28_s14, 32, %s30_s16, [#allocation6]  }
   0x5   :  { %s18_s21 = sshll.u32 %s226_s20, 4  ;;  %s38_s24 = sshll.u32 %s266_s2, 4  ;;  %s19_s21 = int_to_ptr.vmem [resolvable:$true] %s18_s21  ;;  %s39_s24 = int_to_ptr.hbm [resolvable:$true] %s38_s24 }
   0x6   :  { %21 = dma.hbm_to_vmem [thread:$0]  %s17_s19, 32, %s19_s21, [#allocation3]  }
   0x7   :  { %s227_s1 = smov [#allocation7]  }
   0x8   :  { %s40_s25 = sshll.u32 %s227_s1, 4  ;;  %s41_s25 = int_to_ptr.vmem [resolvable:$true] %s40_s25 }
   0x9   :  { %43 = dma.hbm_to_vmem [thread:$0]  %s39_s24, 256, %s41_s25, [#allocation6]  }
   0xa   :  { %219 = dma.done.wait [#allocation3], 32  }
   0xb   :  { %220 = vsyncadd [#allocation3], 4294967264 }
   0xc   :  { %221 = dma.done.wait [#allocation6], 288  }
   0xd   :  { %222 = vsyncadd [#allocation6], 4294967008  ;;  %v56_v0 = vld [vmem:[#allocation7] sm:$0xff]  ;;  %s228_s0 = smov 127   ;;  %v57_v1 = vld [vmem:[#allocation7 + $0x8] sm:$0xff]  ;;  %v66_v3 = vlaneseq  ;;  %v229_v5 = vmov 0  }
   0xe   :  { %62 = vrot.lane.b32.xlu0 %v56_v0, %s228_s0  ;;  %v58_v2 = vld [vmem:[#allocation2] sm:$0x3]  ;;  %s230_s2 = smov 112   ;;  %v60_v17 = vld [vmem:[#allocation5] sm:$0x3]  ;;  %s231_s26 = smov [#allocation8]  }
   0xf   :  { %vm59_vm0 = vcmp.ne.s32.totalorder %v58_v2, 0  ;;  %v67_v7 = vand.u32 127, %v66_v3  ;;  %vm61_vm4 = vcmp.ne.s32.totalorder %v60_v17, 0  ;;  %s103_s27 = sshll.u32 %s231_s26, 4  ;;  %s105_s30 = sshll.u32 %s267_s3, 4  ;;  %s104_s27 = int_to_ptr.vmem [resolvable:$true] %s103_s27  ;;  %s106_s30 = int_to_ptr.hbm [resolvable:$true] %s105_s30 }
  0x10   :  { %v71_v6 = vsel %vm59_vm0, 1, %v229_v5  ;;  %v87_v19 = vsel %vm61_vm4, 1, %v229_v5 }
  0x11   :  { %v72_v8 = vperm.slane %v71_v6, 0  ;;  %vm68_vm1 = vcmp.lt.s32.totalorder %v67_v7, 127  ;;  %v73_v10 = vperm.slane %v71_v6, 1  ;;  %v88_v20 = vperm.slane %v87_v19, 0 }
  0x12   :  { %v89_v21 = vperm.slane %v87_v19, 1  ;;  %vm84_vm5 = vcmp.lt.s32.totalorder %v67_v7, 112 }
  0x13   :  { %vm74_vm2 = vcmp.eq.s32.totalorder %v72_v8, 1  ;;  %vm75_vm3 = vcmp.eq.s32.totalorder %v73_v10, 1  ;;  %vm90_vm6 = vcmp.eq.s32.totalorder %v88_v20, 1 }
  0x14   :  { %vm91_vm7 = vcmp.eq.s32.totalorder %v89_v21, 1 }
  0x16   :  { %64 = vrot.lane.b32.xlu0 %v57_v1, %s228_s0 }
  0x80   :  { %v63_v4 = vpop.permute.xlu0 %62 }
  0x88   :  { %v65_v9 = vpop.permute.xlu0 %64 }
  0x89   :  { %v69_v11 = vsel %vm68_vm1, %v63_v4, %v65_v9  ;;  %v70_v14 = vsel %vm68_vm1, %v65_v9, %v63_v4 }
  0x8a   :  { %v76_v12 = vsel %vm74_vm2, %v56_v0, %v69_v11  ;;  %v77_v15 = vsel %vm75_vm3, %v57_v1, %v70_v14 }
  0x8b   :  { %v78_v13 = vmax.f32 %v56_v0, %v76_v12  ;;  %v79_v16 = vmax.f32 %v57_v1, %v77_v15 }
  0x8d   :  { %80 = vrot.lane.b32.xlu1 %v78_v13, %s230_s2 }
  0x95   :  { %82 = vrot.lane.b32.xlu1 %v79_v16, %s230_s2 }
  0xff   :  { %v81_v18 = vpop.permute.xlu1 %80 }
 0x107   :  { %v83_v22 = vpop.permute.xlu1 %82 }
 0x108   :  { %v85_v23 = vsel %vm84_vm5, %v81_v18, %v83_v22  ;;  %v86_v24 = vsel %vm84_vm5, %v83_v22, %v81_v18 }
 0x109   :  { %v92_v25 = vsel %vm90_vm6, %v78_v13, %v85_v23  ;;  %v93_v26 = vsel %vm91_vm7, %v79_v16, %v86_v24 }
 0x10a   :  { %v94_v27 = vmax.f32 %v78_v13, %v92_v25  ;;  %v95_v28 = vmax.f32 %v79_v16, %v93_v26 }
 0x10c   :  { %96 = vst [vmem:[#allocation8] sm:$0xff] %v94_v27 }
 0x10d   :  { %97 = vst [vmem:[#allocation8 + $0x8] sm:$0xff] %v95_v28 }
 0x10e   :  { %108 = dma.vmem_to_hbm [thread:$0]  %s104_s27, 256, %s106_s30, [#allocation4]  }
 0x10f   :  { %223 = dma.done.wait [#allocation4], 256  }
 0x110   :  { %224 = vsyncadd [#allocation4], 4294967040 }
 0x111   :  { %113 = vsyncpa [#allocation3], 1 }
 0x112   :  { %114 = vsyncpa [#allocation6], 1 }
 0x113   :  { %115 = vsyncpa [#allocation4], 1 }

</bundles_post_ra>
